<compile_context>
chip_gen: v6e
topology: v6e:2x2x1
jax: 0.10.0
libtpu: 0.0.40
codegen_flags: <defaults>
</compile_context>

<pallas_src>
import functools
import math

import jax
import jax.numpy as jnp
from jax import lax
from jax.experimental import pallas as pl
from jax.experimental.pallas import tpu as pltpu


def _round_up(x, m):
    return ((x + m - 1) // m) * m


def _sublane_multiple(dtype):
    return {4: 8, 2: 16, 1: 32}.get(jnp.dtype(dtype).itemsize, 8)


# ---------------------------------------------------------------------------
# Path A: VMEM-resident table + vocab-chunked one-hot MXU gather.
# ---------------------------------------------------------------------------
def _embedding_resident_kernel(ids_ref, table_ref, out_ref, *, scale, k_chunk):
    # ids_ref  : (T, 1)     int32 token ids for this tile
    # table_ref: (vocab, d) full table, same block every step -> resident
    # out_ref  : (T, d)     lane/sublane-dense output tile
    ids = ids_ref[...]                                            # (T, 1)
    vocab, d_model = table_ref.shape
    t = out_ref.shape[0]

    acc = jnp.zeros((t, d_model), jnp.float32)
    n_chunks = pl.cdiv(vocab, k_chunk)
    for c in range(n_chunks):                                     # static unroll
        k0 = c * k_chunk
        kc = min(k_chunk, vocab - k0)
        # (1, kc) iota; broadcast against (T, 1) ids by the compare.
        col = k0 + lax.broadcasted_iota(jnp.int32, (1, kc), 1)
        # Fold sqrt(d_model) into the (f32) one-hot: MXU applies the scale.
        onehot = jnp.where(col == ids, jnp.float32(scale), jnp.float32(0.0))
        acc = acc + jnp.dot(onehot,
                            table_ref[k0:k0 + kc, :].astype(jnp.float32),
                            preferred_element_type=jnp.float32)
    out_ref[...] = acc.astype(out_ref.dtype)


def _embedding_resident(ids_flat, table, scale, tile, k_chunk, vmem_limit):
    n_tokens = ids_flat.shape[0]
    vocab, d_model = table.shape
    n_pad = _round_up(max(n_tokens, tile), tile)
    num_tiles = n_pad // tile
    ids = jnp.pad(ids_flat, (0, n_pad - n_tokens)).reshape(n_pad, 1)

    out = pl.pallas_call(
        functools.partial(_embedding_resident_kernel, scale=scale, k_chunk=k_chunk),
        out_shape=jax.ShapeDtypeStruct((n_pad, d_model), table.dtype),
        grid_spec=pltpu.PrefetchScalarGridSpec(
            num_scalar_prefetch=0,
            grid=(num_tiles,),
            in_specs=[
                pl.BlockSpec((tile, 1), lambda i: (i, 0)),          # ids tile
                pl.BlockSpec((vocab, d_model), lambda i: (0, 0)),   # resident table
            ],
            out_specs=pl.BlockSpec((tile, d_model), lambda i: (i, 0)),
        ),
        compiler_params=pltpu.CompilerParams(
            dimension_semantics=("parallel",),     # each tile written exactly once
            vmem_limit_bytes=int(vmem_limit),
        ),
    )(ids, table)
    return out[:n_tokens]


# ---------------------------------------------------------------------------
# Path B: batched manual HBM gather (large vocab), table stays in HBM.
# ---------------------------------------------------------------------------
def _embedding_gather_kernel(ids_smem, table_hbm, out_ref, buf, sem,
                             *, scale, tile, chunk):
    # ids_smem : (n_pad,)            int32 token ids (scalar prefetch, SMEM)
    # table_hbm: (vocab, d_model)    embedding table, left in HBM (pl.ANY)
    # out_ref  : (tile, d_model)     output block in VMEM
    # buf      : (2*chunk, d_model)  VMEM staging (two half-tile slots)
    # sem      : (2,)                one DMA semaphore per slot
    i = pl.program_id(0)
    base = i * tile
    n_chunks = tile // chunk                         # static

    def start_fetch(c, slot):
        off = slot * chunk
        @pl.loop(0, chunk)
        def _(j):
            row = ids_smem[base + c * chunk + j]
            pltpu.make_async_copy(
                table_hbm.at[pl.ds(row, 1), :],
                buf.at[pl.ds(off + j, 1), :],
                sem.at[slot],
            ).start()

    def wait_fetch(slot):
        off = slot * chunk
        @pl.loop(0, chunk)
        def _(j):
            pltpu.make_async_copy(
                table_hbm.at[pl.ds(0, 1), :],
                buf.at[pl.ds(off + j, 1), :],
                sem.at[slot],
            ).wait()

    # Prime the first half-tile for this (self-contained) grid step.
    start_fetch(0, 0)

    @pl.loop(0, n_chunks)
    def _(c):
        slot = lax.rem(c, 2)
        if n_chunks > 1:
            # Prefetch the next half-tile before waiting, to hide DMA latency.
            @pl.when(c + 1 < n_chunks)
            def _():
                start_fetch(c + 1, 1 - slot)
        wait_fetch(slot)
        rows = buf[pl.ds(pl.multiple_of(slot * chunk, chunk), chunk), :]
        out_ref[pl.ds(pl.multiple_of(c * chunk, chunk), chunk), :] = (
            rows.astype(jnp.float32) * scale
        ).astype(out_ref.dtype)


def _embedding_gather(ids_flat, table, scale, tile, chunk):
    n_tokens = ids_flat.shape[0]
    vocab, d_model = table.shape
    n_pad = _round_up(max(n_tokens, tile), tile)
    num_tiles = n_pad // tile
    ids = jnp.pad(ids_flat, (0, n_pad - n_tokens))

    out = pl.pallas_call(
        functools.partial(_embedding_gather_kernel, scale=scale,
                          tile=tile, chunk=chunk),
        out_shape=jax.ShapeDtypeStruct((n_pad, d_model), table.dtype),
        grid_spec=pltpu.PrefetchScalarGridSpec(
            num_scalar_prefetch=1,                       # ids land in SMEM
            grid=(num_tiles,),
            in_specs=[pl.BlockSpec(memory_space=pl.ANY)],   # table stays in HBM
            out_specs=pl.BlockSpec((tile, d_model), lambda i, ids: (i, 0)),
            scratch_shapes=[
                pltpu.VMEM((2 * chunk, d_model), table.dtype),
                pltpu.SemaphoreType.DMA((2,)),
            ],
        ),
        compiler_params=pltpu.CompilerParams(
            dimension_semantics=("parallel",),           # v7x: split tiles over TCs
        ),
    )(ids, table)
    return out[:n_tokens]


# ---------------------------------------------------------------------------
# Public wrapper.
# ---------------------------------------------------------------------------
def embedding_forward(x, table, *, token_tile=None, vocab_chunk=1024, path="auto"):
    """x: int token ids (any shape); table: (vocab, d_model) embedding weights."""
    orig_shape = tuple(x.shape)
    vocab, d_model = table.shape
    n_tokens = int(math.prod(orig_shape)) if orig_shape else 1
    scale = float(math.sqrt(d_model))

    # Clamp ids so a bad token can never drive an out-of-range gather/DMA.
    ids_flat = jnp.clip(x.reshape(-1).astype(jnp.int32), 0, vocab - 1)

    # Chip-aware budgets (v7x: 64 MiB VMEM per TensorCore).
    try:
        vmem_cap = int(pltpu.get_tpu_info().vmem_capacity_bytes)
    except Exception:
        vmem_cap = 64 * 1024 * 1024
    try:
        kind = jax.devices()[0].device_kind.lower()
    except Exception:
        kind = ""
    is_v5e = ("v5e" in kind) or ("v5 lite" in kind) or ("v5lite" in kind)

    itemsize = jnp.dtype(table.dtype).itemsize
    sub = _sublane_multiple(table.dtype)

    if token_tile is None:
        token_tile = 128 if is_v5e else 256             # v5e MXU is 128-wide
    tile_a = max(sub, min(_round_up(token_tile, sub), _round_up(n_tokens, sub)))
    k_chunk = max(1, min(vocab_chunk, vocab))

    vmem_limit = min(int(0.85 * vmem_cap), 112 * 1024 * 1024)
    table_bytes = vocab * d_model * itemsize
    work_bytes = (
        2 * table_bytes                                  # table (double-buffered alloc)
        + 2 * tile_a * d_model * itemsize                # output tile (double-buffered)
        + 2 * tile_a * 4                                 # ids tile
        + tile_a * d_model * 4                           # f32 accumulator
        + 3 * tile_a * k_chunk * 4                       # chunked one-hot temps
    )
    vocab_cap = 2048 if is_v5e else 8192                 # one-hot FLOPs ~ vocab*d/token
    resident_ok = (vocab <= vocab_cap) and (work_bytes <= int(0.8 * vmem_limit))

    use_resident = (path == "resident") or (path == "auto" and resident_ok)

    if use_resident:
        out_flat = _embedding_resident(ids_flat, table, scale, tile_a, k_chunk,
                                       vmem_limit)
    else:
        if n_tokens >= 256:
            tile_b, chunk_b = 256, 128
        else:
            tile_b = _round_up(max(n_tokens, sub), sub)
            chunk_b = tile_b
        out_flat = _embedding_gather(ids_flat, table, scale, tile_b, chunk_b)

    return out_flat.reshape(*orig_shape, d_model)


if __name__ == "__main__":
    # Small, deterministic configuration consistent with the module.
    vocab_num = 64
    d_model = 128
    B, S = 2, 8

    key = jax.random.PRNGKey(0)
    k_emb, k_ids = jax.random.split(key)

    # nn.Embedding default init: N(0, 1).
    table = jax.random.normal(k_emb, (vocab_num, d_model), dtype=jnp.float32)
    x = jax.random.randint(k_ids, (B, S), 0, vocab_num, dtype=jnp.int32)

    ref = table[x] * math.sqrt(d_model)

    # Path A (auto-selected here): VMEM-resident table + one-hot MXU gather.
    out_a = jax.block_until_ready(embedding_forward(x, table))
    assert out_a.shape == (B, S, d_model)
    assert jnp.allclose(out_a, ref, atol=1e-5, rtol=1e-5), \
        float(jnp.max(jnp.abs(out_a - ref)))

    # Path B (forced): batched manual HBM gather used for large vocabularies.
    out_b = jax.block_until_ready(embedding_forward(x, table, path="gather"))
    assert out_b.shape == (B, S, d_model)
    assert jnp.allclose(out_b, ref, atol=1e-5, rtol=1e-5), \
        float(jnp.max(jnp.abs(out_b - ref)))

    print("KERNEL_OK")
</pallas_src>

<mosaic_0001>
module attributes {stable_mosaic.version = 11 : i64} {
  func.func @_embedding_resident_kernel(%arg0: i32, %arg1: memref<16x1xi32, #tpu.memory_space<vmem>>, %arg2: memref<64x128xf32, #tpu.memory_space<vmem>>, %arg3: memref<16x128xf32, #tpu.memory_space<vmem>>) attributes {dimension_semantics = [#tpu.dimension_semantics<parallel>], iteration_bounds = array<i64: 1>, scalar_prefetch = 0 : i64, scratch_operands = 0 : i64, tpu.core_type = #tpu.core_type<tc>, window_params = [{transform_indices = @transform_0, window_bounds = array<i64: 16, 1>}, {pipeline_mode = #tpu.pipeline_mode<synchronous>, transform_indices = @transform_1, window_bounds = array<i64: 64, 128>}, {transform_indices = @transform_2, window_bounds = array<i64: 16, 128>}]} {
    %c0 = arith.constant 0 : index
    %c0_0 = arith.constant 0 : index
    %0 = vector.load %arg1[%c0, %c0_0] : memref<16x1xi32, #tpu.memory_space<vmem>>, vector<16x1xi32>
    %cst = arith.constant 0.000000e+00 : f32
    %1 = vector.broadcast %cst : f32 to vector<16x128xf32>
    %2 = tpu.iota {dimensions = array<i32: 1>} : vector<1x64xi32>
    %c0_i32 = arith.constant 0 : i32
    %3 = vector.broadcast %c0_i32 : i32 to vector<1x64xi32>
    %4 = arith.addi %3, %2 : vector<1x64xi32>
    %5 = vector.broadcast %4 : vector<1x64xi32> to vector<16x64xi32>
    %6 = vector.broadcast %0 : vector<16x1xi32> to vector<16x64xi32>
    %7 = arith.cmpi eq, %5, %6 : vector<16x64xi32>
    %cst_1 = arith.constant 11.3137083 : f32
    %cst_2 = arith.constant 0.000000e+00 : f32
    %8 = vector.broadcast %cst_1 : f32 to vector<16x64xf32>
    %9 = vector.broadcast %cst_2 : f32 to vector<16x64xf32>
    %10 = arith.select %7, %8, %9 : vector<16x64xi1>, vector<16x64xf32>
    %c0_3 = arith.constant 0 : index
    %c0_4 = arith.constant 0 : index
    %11 = vector.load %arg2[%c0_3, %c0_4] : memref<64x128xf32, #tpu.memory_space<vmem>>, vector<64x128xf32>
    %cst_5 = arith.constant dense<0.000000e+00> : vector<16x128xf32>
    %12 = tpu.matmul %10, %11, %cst_5 {dimension_numbers = #tpu.dot_dimension_numbers<[1], [0], [0], [1], [0, 0, 1, 1], [], []>} : vector<16x64xf32>, vector<64x128xf32>, vector<16x128xf32> -> vector<16x128xf32>
    %13 = arith.addf %1, %12 : vector<16x128xf32>
    %c0_6 = arith.constant 0 : index
    %c0_7 = arith.constant 0 : index
    %14 = vector.load %arg3[%c0_6, %c0_7] : memref<16x128xf32, #tpu.memory_space<vmem>>, vector<16x128xf32>
    tpu.vector_store %arg3[%c0_6, %c0_7], %13 {strides = array<i32>} : memref<16x128xf32, #tpu.memory_space<vmem>>, vector<16x128xf32>,
    return
  }
  func.func @transform_0(%arg0: i32) -> (i32, i32) {
    %c0_i32 = arith.constant 0 : i32
    %c0_i32_0 = arith.constant 0 : i32
    return %arg0, %c0_i32 : i32, i32
  }
  func.func @transform_1(%arg0: i32) -> (i32, i32) {
    %c0_i32 = arith.constant 0 : i32
    %c0_i32_0 = arith.constant 0 : i32
    %c0_i32_1 = arith.constant 0 : i32
    return %c0_i32, %c0_i32_0 : i32, i32
  }
  func.func @transform_2(%arg0: i32) -> (i32, i32) {
    %c0_i32 = arith.constant 0 : i32
    %c0_i32_0 = arith.constant 0 : i32
    return %arg0, %c0_i32 : i32, i32
  }
}

</mosaic_0001>

<bundles_post_ra>
// kernel: tpu_custom_call.1
= control target key start
LH: loop header
LB: loop body
LE: loop exit
PB: predicated region body
PF: predicated region fallthrough
CT: control target
= control target key end

     0   :  { %7 = vsyncpa [#allocation3], 0  ;;  %s270_s0 = inlined_call_operand.vmem [shape: s32[16,1], index: 0, kind: input, shape index: {}]   ;;  %s271_s1 = inlined_call_operand.hbm [shape: f32[64,128], index: 1, kind: input, shape index: {}]   ;;  %s272_s2 = inlined_call_operand.hbm [shape: f32[16,128], index: 2, kind: output, shape index: {}]  }
   0x1   :  { %8 = vsyncpa [#allocation4], 0  ;;  %s231_s9 = smov [#allocation2]  }
   0x2   :  { %s16_s10 = sshll.u32 %s231_s9, 4  ;;  %s17_s10 = int_to_ptr.vmem [resolvable:$true] %s16_s10 }
   0x3   :  { %s195_s11 = scalar_lea.vmem %s17_s10, 1024  ;;  %p200_p1 = scmp.lt.s32.totalorder %s17_s10, %s17_s10 }
   0x4   :  { %p196_p0 = scmp.ne.s32.totalorder %s17_s10, %s195_s11  ;;  %p201_p2 = scmp.lt.s32.totalorder %s195_s11, %s195_s11 }
   0x6   :  { %p202_p3 = por %p201_p2, %p200_p1 }
   0x8   :  { %p203_p4 = pnand %p202_p3, %p196_p0 }
   0xa   :  { %206 = shalt.err (!%p203_p4)
}
   0xb   :  { %s232_s12 = smov 128   ;;  %s233_s13 = smov 8  }
   0xc   :  { %22 = dma.hbm_to_vmem [thread:$0]  %s271_s1, 1024, %s17_s10, [#allocation3], %s232_s12, %s232_s12, %s233_s13  }
   0xd   :  { %227 = dma.done.wait [#allocation3], 1024  }
   0xe   :  { %228 = vsyncadd [#allocation3], 4294966272  ;;  %v234_v0 = vmov 0   ;;  %v26_v1 = vld [vmem:[%s270_s0] sm:$0xff]  ;;  %v47_v2 = vld [vmem:[#allocation2 + $0x38] sm:$0xff]  ;;  %v28_v11 = vlaneseq  ;;  %vm48_vm0 = vcmask 523264  }
   0xf   :  { %186 = vset.pattern.permute.xlu0 %v234_v0  ;;  %161 = vmatprep.subr.mxu0 %v47_v2  ;;  %v46_v3 = vld [vmem:[#allocation2 + $0x30] sm:$0xff]  ;;  %v27_v4 = vld [vmem:[%s270_s0 + $0x8] sm:$0xff]  ;;  %v44_v6 = vld [vmem:[#allocation2 + $0x20] sm:$0xff]  ;;  %v235_v14 = vmov 0.0   ;;  %s236_s0 = smov [#allocation5]  }
  0x10   :  { %31 = vperm.xlu0 %186, %v26_v1   ;;  %162 = vmatpush3.msra.mxu0 %v47_v2  ;;  %v45_v5 = vld [vmem:[#allocation2 + $0x28] sm:$0xff]  ;;  %v43_v7 = vld [vmem:[#allocation2 + $0x18] sm:$0xff]  ;;  %v42_v8 = vld [vmem:[#allocation2 + $0x10] sm:$0xff]  ;;  %v29_v12 = vand.u32 127, %v28_v11  ;;  %s137_s1 = sshll.u32 %s236_s0, 4  ;;  %s138_s1 = int_to_ptr.vmem [resolvable:$true] %s137_s1 }
  0x11   :  { %163 = vmatprep.subr.mxu0 %v46_v3  ;;  %v41_v9 = vld [vmem:[#allocation2 + $0x8] sm:$0xff]  ;;  %v40_v10 = vld [vmem:[#allocation2] sm:$0xff]  ;;  %s207_s20 = scalar_lea.vmem %s138_s1, 256  ;;  %p212_p6 = scmp.lt.s32.totalorder %s138_s1, %s138_s1 }
  0x12   :  { %164 = vmatpush3.msra.mxu0 %v46_v3  ;;  %p208_p5 = scmp.ne.s32.totalorder %s138_s1, %s207_s20  ;;  %p213_p7 = scmp.lt.s32.totalorder %s207_s20, %s207_s20 }
  0x13   :  { %165 = vmatprep.subr.mxu0 %v45_v5 }
  0x14   :  { %34 = vperm.xlu0 %186, %v27_v4   ;;  %166 = vmatpush3.msra.mxu0 %v45_v5  ;;  %p214_p8 = por %p213_p7, %p212_p6 }
  0x15   :  { %167 = vmatprep.subr.mxu0 %v44_v6 }
  0x16   :  { %168 = vmatpush3.msra.mxu0 %v44_v6  ;;  %p215_p9 = pnand %p214_p8, %p208_p5 }
  0x17   :  { %169 = vmatprep.subr.mxu0 %v43_v7 }
  0x18   :  { %170 = vmatpush3.msra.mxu0 %v43_v7 }
  0x19   :  { %171 = vmatprep.subr.mxu0 %v42_v8 }
  0x1a   :  { %172 = vmatpush3.msra.mxu0 %v42_v8 }
  0x1b   :  { %173 = vmatprep.subr.mxu0 %v41_v9 }
  0x1c   :  { %174 = vmatpush3.msra.mxu0 %v41_v9 }
  0x1d   :  { %175 = vmatprep.subr.mxu0 %v40_v10 }
  0x1e   :  { %176 = vmatpush3.msra.mxu0 %v40_v10 }
  0x8b   :  { %v32_v13 = vpop.permute.xlu0 %31 }
  0x8c   :  { %vm36_vm1 = vcmp.eq.s32.totalorder %v29_v12, %v32_v13 }
  0x8d   :  { %v38_v15 = vsel %vm36_vm1, 11.313708, %v235_v14 }
  0x8e   :  { %177 = vmatprep.mubr.msk.f32.mxu0 %vm48_vm0, %v38_v15 }
  0x8f   :  { %v35_v16 = vpop.permute.xlu0 %34 }
  0x90   :  { %vm37_vm2 = vcmp.eq.s32.totalorder %v29_v12, %v35_v16 }
  0x91   :  { %v39_v17 = vsel %vm37_vm2, 11.313708, %v235_v14 }
  0x92   :  { %178 = vmatmul.mubr.msk.f32.vlgmr.msra.gmra.mxu0 %vm48_vm0, %v39_v17 }
 0x152   :  { %v179_v18 = vpop.f32.mrf.mxu0 }
 0x153   :  { %131 = vst [vmem:[#allocation5 + $0x8] sm:$0xff] %v179_v18 }
 0x154   :  { %v121_v19 = vpop.f32.mrf.mxu0 }
 0x155   :  { %130 = vst [vmem:[#allocation5] sm:$0xff] %v121_v19 }
 0x156   :  { %218 = shalt.err (!%p215_p9)
}
 0x157   :  { %143 = dma.vmem_to_hbm [thread:$0]  %s138_s1, 256, %s272_s2, [#allocation4], %s232_s12, %s232_s12, %s233_s13  }
 0x158   :  { %229 = dma.done.wait [#allocation4], 256  }
 0x159   :  { %230 = vsyncadd [#allocation4], 4294967040 }
 0x15a   :  { %147 = vsyncpa [#allocation3], 1 }
 0x15b   :  { %148 = vsyncpa [#allocation4], 1 }

</bundles_post_ra>
